<compile_context>
chip_gen: v7x
topology: tpu7x:2x2x1
jax: 0.10.0
libtpu: 0.0.40
codegen_flags: <defaults>
</compile_context>

<pallas_src>
import functools

import jax
import jax.numpy as jnp
from jax.experimental import pallas as pl
from jax.experimental.pallas import tpu as pltpu


def _round_up(n, m):
    return ((n + m - 1) // m) * m


def _gcn_main_kernel(a_ref, pa_ref, xw1_ref, b1_ref, w2_ref, out_ref, h1_acc,
                     *, tk):
    """Per (row tile i, col tile k): accumulate A_hat @ XW1; at last k emit the
    per-i partial pooled logits PA[:, i-tile] @ (relu(H1) @ W2)."""
    k = pl.program_id(1)
    nk = pl.num_programs(1)

    @pl.when(k == 0)
    def _():
        h1_acc[...] = jnp.zeros_like(h1_acc)

    # Slice the k-th row tile out of the fully-resident XW1 (bf16, no DMA).
    row = pl.multiple_of(k * tk, tk)
    xw1_k = xw1_ref[pl.ds(row, tk), :]
    # Layer-1 aggregation: A_hat[i-tile, k-tile] @ XW1_k (bf16 MXU, f32 acc).
    h1_acc[...] += jnp.dot(a_ref[...], xw1_k, preferred_element_type=jnp.float32)

    @pl.when(k == nk - 1)
    def _():
        # Bias + ReLU in f32 (VPU).
        h1 = jnp.maximum(h1_acc[...] + b1_ref[...], 0.0)
        # Layer-2 transform for this row tile of nodes.
        xw2 = jnp.dot(h1.astype(jnp.bfloat16), w2_ref[...],
                      preferred_element_type=jnp.float32)
        # Pool + layer-2 aggregation folded: partial_i = (pool @ A_hat)[:, i-tile] @ xw2.
        out_ref[...] = jnp.dot(pa_ref[...], xw2.astype(jnp.bfloat16),
                               preferred_element_type=jnp.float32)


def _gcn_epilogue_kernel(part_ref, bias_ref, out_ref, *, out_c):
    """Sum per-row-tile partials, add folded pool@b2 bias, masked log_softmax."""
    pooled = jnp.sum(part_ref[...], axis=0) + bias_ref[...]
    col = jax.lax.broadcasted_iota(jnp.int32, pooled.shape, 1)
    valid = col < out_c
    masked = jnp.where(valid, pooled, -1e30)
    m = jnp.max(masked, axis=-1, keepdims=True)
    z = masked - m
    denom = jnp.sum(jnp.where(valid, jnp.exp(z), 0.0), axis=-1, keepdims=True)
    out_ref[...] = z - jnp.log(denom)


def normalized_adjacency(edge_index, num_nodes):
    """GCN-normalized adjacency with self loops: A_hat[dst, src] = 1/sqrt(d_dst d_src)."""
    src = edge_index[0]
    dst = edge_index[1]
    loop = jnp.arange(num_nodes, dtype=edge_index.dtype)
    src = jnp.concatenate([src, loop])
    dst = jnp.concatenate([dst, loop])
    deg = jnp.zeros((num_nodes,), jnp.float32).at[dst].add(1.0)
    dinv = jnp.where(deg > 0, 1.0 / jnp.sqrt(deg), 0.0)
    w = dinv[src] * dinv[dst]
    return jnp.zeros((num_nodes, num_nodes), jnp.float32).at[dst, src].add(w)


def pooling_matrix(batch, num_graphs):
    """P[g, n] = 1 if batch[n] == g else 0 (global_add_pool as a matmul)."""
    return (batch[None, :] == jnp.arange(num_graphs)[:, None]).astype(jnp.float32)


def gcn_forward(x, edge_index, batch, w1, b1, w2, b2, num_graphs,
                tile_target=1024):
    n = x.shape[0]
    hidden = w1.shape[1]
    out_c = w2.shape[1]

    # Graph-structure glue (data-dependent scatter) in plain JAX.
    a_hat = normalized_adjacency(edge_index, n)               # [N, N] f32
    pool = pooling_matrix(batch, num_graphs)                  # [G, N] f32
    pa = pool @ a_hat                                         # fold pooling into A_hat
    counts = jnp.sum(pool, axis=1, keepdims=True)             # [G, 1] nodes per graph

    # Layer-1 feature transform hoisted out of the grid (computed exactly once).
    xw1 = x @ w1                                              # [N, hidden] f32

    # TPU-friendly padding: lane-dense feature dims, tileable node dim.
    if n <= tile_target:
        n_pad = _round_up(n, 128)
        tm = tk = n_pad
    else:
        tm = tk = tile_target
        n_pad = _round_up(n, tile_target)
    h_pad = _round_up(hidden, 128)
    c_pad = _round_up(out_c, 128)
    g_pad = _round_up(num_graphs, 8)

    bf16 = jnp.bfloat16
    a_p = jnp.zeros((n_pad, n_pad), jnp.float32).at[:n, :n].set(a_hat).astype(bf16)
    pa_p = jnp.zeros((g_pad, n_pad), jnp.float32).at[:num_graphs, :n].set(pa).astype(bf16)
    xw1_p = jnp.zeros((n_pad, h_pad), jnp.float32).at[:n, :hidden].set(xw1).astype(bf16)
    w2_p = jnp.zeros((h_pad, c_pad), jnp.float32).at[:hidden, :out_c].set(w2).astype(bf16)
    b1_p = jnp.zeros((1, h_pad), jnp.float32).at[:, :hidden].set(b1)
    # pool @ broadcast(b2) == counts * b2; fold into one lane-dense bias slab.
    bias_p = jnp.zeros((g_pad, c_pad), jnp.float32).at[:num_graphs, :out_c].set(counts * b2)

    ni = n_pad // tm
    nk = n_pad // tk
    grid = (ni, nk)

    flops = (2 * n_pad * n_pad * h_pad        # A_hat @ XW1
             + 2 * n_pad * h_pad * c_pad      # H1 @ W2
             + 2 * g_pad * n_pad * c_pad)     # PA @ XW2
    bytes_accessed = (a_p.size * 2 + pa_p.size * 2 + xw1_p.size * 2
                      + w2_p.size * 2 + b1_p.size * 4
                      + ni * g_pad * c_pad * 4)

    main = functools.partial(_gcn_main_kernel, tk=tk)

    # TODO(synk): at real graph scale, replace the dense (padded) A_hat with a
    # block-sparse gathered aggregation via PrefetchScalarGridSpec neighbor
    # indices (and optionally fp8/int8 A_hat); dense bf16 is fine here.
    partials = pl.pallas_call(
        main,
        out_shape=jax.ShapeDtypeStruct((ni, g_pad, c_pad), jnp.float32),
        grid_spec=pltpu.PrefetchScalarGridSpec(
            num_scalar_prefetch=0,
            grid=grid,
            in_specs=[
                pl.BlockSpec((tm, tk), lambda i, k: (i, k)),        # A_hat tile (streamed)
                pl.BlockSpec((g_pad, tm), lambda i, k: (0, i)),     # (pool @ A_hat) col tile
                pl.BlockSpec((n_pad, h_pad), lambda i, k: (0, 0)),  # XW1, fully VMEM-resident
                pl.BlockSpec((1, h_pad), lambda i, k: (0, 0)),      # b1
                pl.BlockSpec((h_pad, c_pad), lambda i, k: (0, 0)),  # W2
            ],
            # Per-row-tile partial pooled logits -> i axis is race-free & parallel.
            out_specs=pl.BlockSpec((None, g_pad, c_pad), lambda i, k: (i, 0, 0)),
            scratch_shapes=[
                pltpu.VMEM((tm, h_pad), jnp.float32),   # layer-1 row-tile accumulator
            ],
        ),
        compiler_params=pltpu.CompilerParams(
            # i (row tiles) is independent -> megacore-parallel on v7x;
            # k is the layer-1 reduction axis -> arbitrary (innermost).
            dimension_semantics=("parallel", "arbitrary"),
            vmem_limit_bytes=40 * 1024 * 1024,
        ),
        cost_estimate=pl.CostEstimate(
            flops=flops,
            transcendentals=0,
            bytes_accessed=bytes_accessed,
        ),
    )(a_p, pa_p, xw1_p, b1_p, w2_p)

    # Tiny epilogue: cross-row-tile sum + folded bias + masked log_softmax.
    epi = functools.partial(_gcn_epilogue_kernel, out_c=out_c)
    out_p = pl.pallas_call(
        epi,
        out_shape=jax.ShapeDtypeStruct((g_pad, c_pad), jnp.float32),
        in_specs=[pl.BlockSpec(memory_space=pltpu.MemorySpace.VMEM),
                  pl.BlockSpec(memory_space=pltpu.MemorySpace.VMEM)],
        out_specs=pl.BlockSpec(memory_space=pltpu.MemorySpace.VMEM),
    )(partials, bias_p)

    # Slice off graph/class padding.
    return out_p[:num_graphs, :out_c]


def glorot(key, fan_in, fan_out):
    limit = jnp.sqrt(6.0 / (fan_in + fan_out))
    return jax.random.uniform(key, (fan_in, fan_out), jnp.float32, -limit, limit)


def reference_forward(a_hat, pool, x, w1, b1, w2, b2):
    h1 = jnp.maximum(a_hat @ (x @ w1) + b1, 0.0)
    h2 = a_hat @ (h1 @ w2) + b2
    pooled = pool @ h2
    return jax.nn.log_softmax(pooled, axis=-1)


if __name__ == "__main__":
    key = jax.random.PRNGKey(0)
    k_x, k_w1, k_w2 = jax.random.split(key, 3)

    # Graph data (matches the PyTorch test fixture shapes).
    batch = jnp.array([0, 0, 0, 1, 1, 2, 2, 2], dtype=jnp.int32)
    edge_index = jnp.array(
        [[0, 1, 1, 2, 2, 3, 3, 4, 4, 5, 5, 6, 6, 7],
         [1, 0, 2, 1, 3, 2, 4, 3, 5, 4, 6, 5, 7, 6]], dtype=jnp.int32)
    # edge_label_index is unused for the graph-level task config.
    x = jax.random.normal(k_x, (8, 3), dtype=jnp.float32)

    num_graphs = 3
    hidden, out_channels = 16, 7

    # Deterministic parameter init (GCNConv: glorot weight, zero bias).
    w1 = glorot(k_w1, 3, hidden)
    b1 = jnp.zeros((1, hidden), jnp.float32)
    w2 = glorot(k_w2, hidden, out_channels)
    b2 = jnp.zeros((1, out_channels), jnp.float32)

    out = gcn_forward(x, edge_index, batch, w1, b1, w2, b2, num_graphs)
    out = jax.block_until_ready(out)

    a_hat = normalized_adjacency(edge_index, x.shape[0])
    pool = pooling_matrix(batch, num_graphs)
    ref = reference_forward(a_hat, pool, x, w1, b1, w2, b2)

    assert out.shape == (num_graphs, out_channels)
    assert bool(jnp.all(jnp.isfinite(out)))
    # bf16 MXU operands with f32 accumulation vs. pure-f32 reference.
    assert jnp.allclose(out, ref, atol=5e-2, rtol=5e-2), (out, ref)

    print("KERNEL_OK")
</pallas_src>

<mosaic_0001>
module attributes {stable_mosaic.version = 11 : i64} {
  func.func @_gcn_main_kernel(%arg0: i32, %arg1: i32, %arg2: memref<128x128xbf16, #tpu.memory_space<vmem>>, %arg3: memref<8x128xbf16, #tpu.memory_space<vmem>>, %arg4: memref<128x128xbf16, #tpu.memory_space<vmem>>, %arg5: memref<1x128xf32, #tpu.memory_space<vmem>>, %arg6: memref<128x128xbf16, #tpu.memory_space<vmem>>, %arg7: memref<1x8x128xf32, #tpu.memory_space<vmem>>, %arg8: memref<128x128xf32, #tpu.memory_space<vmem>>) attributes {dimension_semantics = [#tpu.dimension_semantics<parallel>, #tpu.dimension_semantics<arbitrary>], iteration_bounds = array<i64: 1, 1>, scalar_prefetch = 0 : i64, scratch_operands = 1 : i64, tpu.core_type = #tpu.core_type<tc>, window_params = [{transform_indices = @transform_0, window_bounds = array<i64: 128, 128>}, {transform_indices = @transform_1, window_bounds = array<i64: 8, 128>}, {pipeline_mode = #tpu.pipeline_mode<synchronous>, transform_indices = @transform_2, window_bounds = array<i64: 128, 128>}, {pipeline_mode = #tpu.pipeline_mode<synchronous>, transform_indices = @transform_3, window_bounds = array<i64: 1, 128>}, {pipeline_mode = #tpu.pipeline_mode<synchronous>, transform_indices = @transform_4, window_bounds = array<i64: 128, 128>}, {transform_indices = @transform_5, window_bounds = array<i64: 1, 8, 128>}]} {
    %c0_i32 = arith.constant 0 : i32
    %0 = arith.cmpi eq, %arg1, %c0_i32 : i32
    %1 = arith.extui %0 : i1 to i32
    %c0_i32_0 = arith.constant 0 : i32
    %2 = arith.cmpi ne, %1, %c0_i32_0 : i32
    scf.if %2 {
      %cst_9 = arith.constant 0.000000e+00 : f32
      %15 = vector.broadcast %cst_9 : f32 to vector<128x128xf32>
      %c0_10 = arith.constant 0 : index
      %c0_11 = arith.constant 0 : index
      %16 = vector.load %arg8[%c0_10, %c0_11] : memref<128x128xf32, #tpu.memory_space<vmem>>, vector<128x128xf32>
      tpu.vector_store %arg8[%c0_10, %c0_11], %15 {strides = array<i32>} : memref<128x128xf32, #tpu.memory_space<vmem>>, vector<128x128xf32>,
    } else {
    }
    %c128_i32 = arith.constant 128 : i32
    %3 = arith.muli %arg1, %c128_i32 : i32
    %4 = tpu.assume_multiple %3, 128 : i32
    %5 = arith.index_cast %4 : i32 to index
    %c0 = arith.constant 0 : index
    %6 = vector.load %arg4[%5, %c0] : memref<128x128xbf16, #tpu.memory_space<vmem>>, vector<128x128xbf16>
    %c0_1 = arith.constant 0 : index
    %c0_2 = arith.constant 0 : index
    %7 = vector.load %arg8[%c0_1, %c0_2] : memref<128x128xf32, #tpu.memory_space<vmem>>, vector<128x128xf32>
    %c0_3 = arith.constant 0 : index
    %c0_4 = arith.constant 0 : index
    %8 = vector.load %arg2[%c0_3, %c0_4] : memref<128x128xbf16, #tpu.memory_space<vmem>>, vector<128x128xbf16>
    %cst = arith.constant dense<0.000000e+00> : vector<128x128xf32>
    %9 = tpu.matmul %8, %6, %cst {dimension_numbers = #tpu.dot_dimension_numbers<[1], [0], [0], [1], [0, 0, 1, 1], [], []>} : vector<128x128xbf16>, vector<128x128xbf16>, vector<128x128xf32> -> vector<128x128xf32>
    %10 = arith.addf %7, %9 : vector<128x128xf32>
    %c0_5 = arith.constant 0 : index
    %c0_6 = arith.constant 0 : index
    %11 = vector.load %arg8[%c0_5, %c0_6] : memref<128x128xf32, #tpu.memory_space<vmem>>, vector<128x128xf32>
    tpu.vector_store %arg8[%c0_5, %c0_6], %10 {strides = array<i32>} : memref<128x128xf32, #tpu.memory_space<vmem>>, vector<128x128xf32>,
    %c0_i32_7 = arith.constant 0 : i32
    %12 = arith.cmpi eq, %arg1, %c0_i32_7 : i32
    %13 = arith.extui %12 : i1 to i32
    %c0_i32_8 = arith.constant 0 : i32
    %14 = arith.cmpi ne, %13, %c0_i32_8 : i32
    scf.if %14 {
      %c0_9 = arith.constant 0 : index
      %c0_10 = arith.constant 0 : index
      %15 = vector.load %arg8[%c0_9, %c0_10] : memref<128x128xf32, #tpu.memory_space<vmem>>, vector<128x128xf32>
      %c0_11 = arith.constant 0 : index
      %c0_12 = arith.constant 0 : index
      %16 = vector.load %arg5[%c0_11, %c0_12] : memref<1x128xf32, #tpu.memory_space<vmem>>, vector<1x128xf32>
      %17 = vector.broadcast %16 : vector<1x128xf32> to vector<128x128xf32>
      %18 = arith.addf %15, %17 : vector<128x128xf32>
      %cst_13 = arith.constant 0.000000e+00 : f32
      %19 = vector.broadcast %cst_13 : f32 to vector<128x128xf32>
      %20 = arith.maximumf %18, %19 : vector<128x128xf32>
      %21 = arith.truncf %20 : vector<128x128xf32> to vector<128x128xbf16>
      %c0_14 = arith.constant 0 : index
      %c0_15 = arith.constant 0 : index
      %22 = vector.load %arg6[%c0_14, %c0_15] : memref<128x128xbf16, #tpu.memory_space<vmem>>, vector<128x128xbf16>
      %cst_16 = arith.constant dense<0.000000e+00> : vector<128x128xf32>
      %23 = tpu.matmul %21, %22, %cst_16 {dimension_numbers = #tpu.dot_dimension_numbers<[1], [0], [0], [1], [0, 0, 1, 1], [], []>} : vector<128x128xbf16>, vector<128x128xbf16>, vector<128x128xf32> -> vector<128x128xf32>
      %c0_17 = arith.constant 0 : index
      %c0_18 = arith.constant 0 : index
      %24 = vector.load %arg3[%c0_17, %c0_18] : memref<8x128xbf16, #tpu.memory_space<vmem>>, vector<8x128xbf16>
      %25 = arith.truncf %23 : vector<128x128xf32> to vector<128x128xbf16>
      %cst_19 = arith.constant dense<0.000000e+00> : vector<8x128xf32>
      %26 = tpu.matmul %24, %25, %cst_19 {dimension_numbers = #tpu.dot_dimension_numbers<[1], [0], [0], [1], [0, 0, 1, 1], [], []>} : vector<8x128xbf16>, vector<128x128xbf16>, vector<8x128xf32> -> vector<8x128xf32>
      %c0_20 = arith.constant 0 : index
      %c0_21 = arith.constant 0 : index
      %c0_22 = arith.constant 0 : index
      %27 = vector.load %arg7[%c0_20, %c0_21, %c0_22] : memref<1x8x128xf32, #tpu.memory_space<vmem>>, vector<1x8x128xf32>
      %28 = vector.shape_cast %27 : vector<1x8x128xf32> to vector<8x128xf32>
      %29 = vector.shape_cast %26 : vector<8x128xf32> to vector<1x8x128xf32>
      tpu.vector_store %arg7[%c0_20, %c0_21, %c0_22], %29 {strides = array<i32>} : memref<1x8x128xf32, #tpu.memory_space<vmem>>, vector<1x8x128xf32>,
    } else {
    }
    return
  }
  func.func @transform_0(%arg0: i32, %arg1: i32) -> (i32, i32) {
    %c0_i32 = arith.constant 0 : i32
    return %arg0, %arg1 : i32, i32
  }
  func.func @transform_1(%arg0: i32, %arg1: i32) -> (i32, i32) {
    %c0_i32 = arith.constant 0 : i32
    %c0_i32_0 = arith.constant 0 : i32
    return %c0_i32, %arg0 : i32, i32
  }
  func.func @transform_2(%arg0: i32, %arg1: i32) -> (i32, i32) {
    %c0_i32 = arith.constant 0 : i32
    %c0_i32_0 = arith.constant 0 : i32
    %c0_i32_1 = arith.constant 0 : i32
    return %c0_i32, %c0_i32_0 : i32, i32
  }
  func.func @transform_3(%arg0: i32, %arg1: i32) -> (i32, i32) {
    %c0_i32 = arith.constant 0 : i32
    %c0_i32_0 = arith.constant 0 : i32
    %c0_i32_1 = arith.constant 0 : i32
    return %c0_i32, %c0_i32_0 : i32, i32
  }
  func.func @transform_4(%arg0: i32, %arg1: i32) -> (i32, i32) {
    %c0_i32 = arith.constant 0 : i32
    %c0_i32_0 = arith.constant 0 : i32
    %c0_i32_1 = arith.constant 0 : i32
    return %c0_i32, %c0_i32_0 : i32, i32
  }
  func.func @transform_5(%arg0: i32, %arg1: i32) -> (i32, i32, i32) {
    %c0_i32 = arith.constant 0 : i32
    %c0_i32_0 = arith.constant 0 : i32
    %c0_i32_1 = arith.constant 0 : i32
    return %arg0, %c0_i32, %c0_i32_0 : i32, i32, i32
  }
}

</mosaic_0001>

<bundles_post_ra>
// kernel: tpu_custom_call.1
= control target key start
LH: loop header
LB: loop body
LE: loop exit
PB: predicated region body
PF: predicated region fallthrough
CT: control target
= control target key end

     0   :  { %10 = vsyncpa [#allocation4], 0  ;;  %s1095_s0 = inlined_call_operand.hbm [shape: bf16[128,128], index: 0, kind: input, shape index: {}]   ;;  %s1096_s1 = inlined_call_operand.hbm [shape: bf16[8,128], index: 1, kind: input, shape index: {}]   ;;  %s1097_s2 = inlined_call_operand.hbm [shape: bf16[128,128], index: 2, kind: input, shape index: {}]   ;;  %s1098_s3 = inlined_call_operand.vmem [shape: f32[1,128], index: 3, kind: input, shape index: {}]   ;;  %s1099_s4 = inlined_call_operand.hbm [shape: bf16[128,128], index: 4, kind: input, shape index: {}]   ;;  %s1100_s5 = inlined_call_operand.hbm [shape: f32[1,8,128], index: 5, kind: output, shape index: {}]  }
   0x1   :  { %11 = vsyncpa [#allocation7], 0 }
   0x2   :  { %12 = vsyncpa [#allocation10], 0 }
   0x3   :  { %13 = vsyncpa [#allocation5], 0  ;;  %s970_s18 = smov [#allocation6]   ;;  %s971_s20 = smov [#allocation3]  }
   0x4   :  { %s32_s19 = sshll.u32 %s970_s18, 4  ;;  %s19_s21 = sshll.u32 %s971_s20, 4  ;;  %s33_s19 = int_to_ptr.vmem [resolvable:$true] %s32_s19  ;;  %s1009_s21 = int_to_ptr.vmem [resolvable:$true] %s19_s21 }
   0x5   :  { %s852_s24 = scalar_lea.hbm %s1096_s1, 64 }
   0x6   :  { %p853_p0 = scmp.ne.s32.totalorder %s1096_s1, %s852_s24  ;;  %p856_p1 = scmp.lt.u32.totalorder %s852_s24, %s1096_s1 }
   0x8   :  { %p858_p2 = pnand %p856_p1, %p853_p0 }
   0xa   :  { %861 = shalt.err (!%p858_p2)
}
   0xb   :  { %s862_s29 = scalar_lea.vmem %s33_s19, 64  ;;  %p867_p4 = scmp.lt.s32.totalorder %s33_s19, %s33_s19 }
   0xc   :  { %p863_p3 = scmp.ne.s32.totalorder %s33_s19, %s862_s29  ;;  %p868_p5 = scmp.lt.s32.totalorder %s862_s29, %s862_s29 }
   0xe   :  { %p869_p6 = por %p868_p5, %p867_p4 }
  0x10   :  { %p870_p7 = pnand %p869_p6, %p863_p3 }
  0x12   :  { %873 = shalt.err (!%p870_p7)
}
  0x13   :  { %35 = dma.hbm_to_vmem [thread:$0]  %s1096_s1, 64, %s33_s19, [#allocation7]  }
  0x14   :  { %s874_s9 = scalar_lea.hbm %s1095_s0, 1024 }
  0x15   :  { %p875_p8 = scmp.ne.s32.totalorder %s1095_s0, %s874_s9  ;;  %p878_p9 = scmp.lt.u32.totalorder %s874_s9, %s1095_s0 }
  0x17   :  { %p880_p10 = pnand %p878_p9, %p875_p8 }
  0x19   :  { %883 = shalt.err (!%p880_p10)
}
  0x1a   :  { %s884_s14 = scalar_lea.vmem %s1009_s21, 1024  ;;  %p889_p12 = scmp.lt.s32.totalorder %s1009_s21, %s1009_s21 }
  0x1b   :  { %p885_p11 = scmp.ne.s32.totalorder %s1009_s21, %s884_s14  ;;  %p890_p13 = scmp.lt.s32.totalorder %s884_s14, %s884_s14 }
  0x1d   :  { %p891_p0 = por %p890_p13, %p889_p12 }
  0x1f   :  { %p892_p1 = pnand %p891_p0, %p885_p11 }
  0x21   :  { %895 = shalt.err (!%p892_p1)
}
  0x22   :  { %s972_s1 = smov 64   ;;  %s973_s15 = smov 4  }
  0x23   :  { %25 = dma.hbm_to_vmem [thread:$0]  %s1095_s0, 1024, %s1009_s21, [#allocation4], %s972_s1, %s972_s1, %s973_s15  }
  0x24   :  { %s974_s18 = smov [#allocation8]   ;;  %s975_s20 = smov [#allocation9]  }
  0x25   :  { %s41_s19 = sshll.u32 %s974_s18, 4  ;;  %s55_s22 = sshll.u32 %s975_s20, 4  ;;  %s42_s19 = int_to_ptr.vmem [resolvable:$true] %s41_s19  ;;  %s1043_s22 = int_to_ptr.vmem [resolvable:$true] %s55_s22 }
  0x26   :  { %s896_s25 = scalar_lea.hbm %s1097_s2, 1024 }
  0x27   :  { %p897_p2 = scmp.ne.s32.totalorder %s1097_s2, %s896_s25  ;;  %p900_p3 = scmp.lt.u32.totalorder %s896_s25, %s1097_s2 }
  0x29   :  { %p902_p4 = pnand %p900_p3, %p897_p2 }
  0x2b   :  { %905 = shalt.err (!%p902_p4)
}
  0x2c   :  { %s906_s0 = scalar_lea.vmem %s42_s19, 1024  ;;  %p911_p6 = scmp.lt.s32.totalorder %s42_s19, %s42_s19 }
  0x2d   :  { %p907_p5 = scmp.ne.s32.totalorder %s42_s19, %s906_s0  ;;  %p912_p7 = scmp.lt.s32.totalorder %s906_s0, %s906_s0 }
  0x2f   :  { %p913_p8 = por %p912_p7, %p911_p6 }
  0x31   :  { %p914_p9 = pnand %p913_p8, %p907_p5 }
  0x33   :  { %917 = shalt.err (!%p914_p9)
}
  0x34   :  { %47 = dma.hbm_to_vmem [thread:$0]  %s1097_s2, 1024, %s42_s19, [#allocation7], %s972_s1, %s972_s1, %s973_s15  }
  0x35   :  { %s918_s8 = scalar_lea.hbm %s1099_s4, 1024 }
  0x36   :  { %p919_p10 = scmp.ne.s32.totalorder %s1099_s4, %s918_s8  ;;  %p922_p11 = scmp.lt.u32.totalorder %s918_s8, %s1099_s4 }
  0x38   :  { %p924_p12 = pnand %p922_p11, %p919_p10 }
  0x3a   :  { %927 = shalt.err (!%p924_p12)
}
  0x3b   :  { %s928_s13 = scalar_lea.vmem %s1043_s22, 1024  ;;  %p933_p0 = scmp.lt.s32.totalorder %s1043_s22, %s1043_s22 }
  0x3c   :  { %p929_p13 = scmp.ne.s32.totalorder %s1043_s22, %s928_s13  ;;  %p934_p1 = scmp.lt.s32.totalorder %s928_s13, %s928_s13 }
  0x3e   :  { %p935_p2 = por %p934_p1, %p933_p0 }
  0x40   :  { %p936_p3 = pnand %p935_p2, %p929_p13 }
  0x42   :  { %939 = shalt.err (!%p936_p3)
}
  0x43   :  { %61 = dma.hbm_to_vmem [thread:$0]  %s1099_s4, 1024, %s1043_s22, [#allocation10], %s972_s1, %s972_s1, %s973_s15  }
  0x44   :  { %962 = dma.done.wait [#allocation4], 1024  }
  0x45   :  { %963 = vsyncadd [#allocation4], 4294966272 }
  0x46   :  { %964 = dma.done.wait [#allocation7], 1088  }
  0x47   :  { %965 = vsyncadd [#allocation7], 4294966208 }
  0x48   :  { %966 = dma.done.wait [#allocation10], 1024  }
  0x49   :  { %967 = vsyncadd [#allocation10], 4294966272  ;;  %v828_v0 = vld [vmem:[#allocation8] sm:$0xff]   ;;  %v829_v1 = vld [vmem:[#allocation8 + $0x8] sm:$0xff]   ;;  %vm977_vm0 = vmmov 0  }
  0x4a   :  { %735 = vmatprep.subr.bf16.mxu0 %v828_v0  ;;  %v830_v2 = vld [vmem:[#allocation8 + $0x10] sm:$0xff]   ;;  %v831_v3 = vld [vmem:[#allocation8 + $0x18] sm:$0xff]   ;;  %v832_v5 = vld [vmem:[#allocation8 + $0x20] sm:$0xff]  }
  0x4b   :  { %736 = vmatpush3.bf16.msra.mxu0 %v828_v0  ;;  %v836_v4 = vld [vmem:[#allocation3] sm:$0xff]   ;;  %v833_v6 = vld [vmem:[#allocation8 + $0x28] sm:$0xff]   ;;  %v834_v9 = vld [vmem:[#allocation8 + $0x30] sm:$0xff]  }
  0x4c   :  { %737 = vmatprep.subr.bf16.mxu0 %v829_v1  ;;  %751 = vmatprep.mubr.bf16.mxu0 %v836_v4  ;;  %v844_v7 = vld [vmem:[#allocation9] sm:$0xff]   ;;  %v845_v8 = vld [vmem:[#allocation9 + $0x8] sm:$0xff]   ;;  %v846_v10 = vld [vmem:[#allocation9 + $0x10] sm:$0xff]  }
  0x4d   :  { %767 = vmatprep.subr.bf16.mxu1 %v844_v7  ;;  %v835_v11 = vld [vmem:[#allocation8 + $0x38] sm:$0xff]   ;;  %v848_v13 = vld [vmem:[#allocation9 + $0x20] sm:$0xff]   ;;  %v838_v15 = vld [vmem:[#allocation3 + $0x10] sm:$0xff]  }
  0x4e   :  { %768 = vmatpush3.bf16.msra.mxu1 %v844_v7  ;;  %v847_v12 = vld [vmem:[#allocation9 + $0x18] sm:$0xff]   ;;  %v837_v14 = vld [vmem:[#allocation3 + $0x8] sm:$0xff]   ;;  %v842_v20 = vld [vmem:[#allocation3 + $0x30] sm:$0xff]  }
  0x4f   :  { %738 = vmatpush3.bf16.msra.mxu0 %v829_v1  ;;  %769 = vmatprep.subr.bf16.mxu1 %v845_v8  ;;  %v849_v16 = vld [vmem:[#allocation9 + $0x28] sm:$0xff]   ;;  %v839_v17 = vld [vmem:[#allocation3 + $0x18] sm:$0xff]   ;;  %v840_v18 = vld [vmem:[#allocation3 + $0x20] sm:$0xff]  }
  0x50   :  { %739 = vmatprep.subr.bf16.mxu0 %v830_v2  ;;  %v841_v19 = vld [vmem:[#allocation3 + $0x28] sm:$0xff]   ;;  %v843_v21 = vld [vmem:[#allocation3 + $0x38] sm:$0xff]   ;;  %v685_v24 = vld [vmem:[%s1098_s3] ss:$0 sm:$0xff]  ;;  %s978_s3 = smov [#allocation11]  }
  0x51   :  { %v850_v22 = vld [vmem:[#allocation9 + $0x30] sm:$0xff]   ;;  %v851_v23 = vld [vmem:[#allocation9 + $0x38] sm:$0xff]   ;;  %s656_s15 = sshll.u32 %s978_s3, 4  ;;  %s657_s15 = int_to_ptr.vmem [resolvable:$true] %s656_s15 }
  0x52   :  { %770 = vmatpush3.bf16.msra.mxu1 %v845_v8  ;;  %s940_s16 = scalar_lea.vmem %s657_s15, 128  ;;  %p945_p5 = scmp.lt.s32.totalorder %s657_s15, %s657_s15 }
  0x53   :  { %740 = vmatpush3.bf16.msra.mxu0 %v830_v2  ;;  %771 = vmatprep.subr.bf16.mxu1 %v846_v10  ;;  %p941_p4 = scmp.ne.s32.totalorder %s657_s15, %s940_s16  ;;  %p946_p6 = scmp.lt.s32.totalorder %s940_s16, %s940_s16 }
  0x54   :  { %741 = vmatprep.subr.bf16.mxu0 %v831_v3 }
  0x55   :  { %p947_p7 = por %p946_p6, %p945_p5 }
  0x56   :  { %772 = vmatpush3.bf16.msra.mxu1 %v846_v10 }
  0x57   :  { %742 = vmatpush3.bf16.msra.mxu0 %v831_v3  ;;  %773 = vmatprep.subr.bf16.mxu1 %v847_v12  ;;  %p948_p8 = pnand %p947_p7, %p941_p4 }
  0x58   :  { %743 = vmatprep.subr.bf16.mxu0 %v832_v5 }
  0x5a   :  { %774 = vmatpush3.bf16.msra.mxu1 %v847_v12 }
  0x5b   :  { %744 = vmatpush3.bf16.msra.mxu0 %v832_v5  ;;  %775 = vmatprep.subr.bf16.mxu1 %v848_v13 }
  0x5c   :  { %745 = vmatprep.subr.bf16.mxu0 %v833_v6 }
  0x5e   :  { %776 = vmatpush3.bf16.msra.mxu1 %v848_v13 }
  0x5f   :  { %746 = vmatpush3.bf16.msra.mxu0 %v833_v6  ;;  %777 = vmatprep.subr.bf16.mxu1 %v849_v16 }
  0x60   :  { %747 = vmatprep.subr.bf16.mxu0 %v834_v9 }
  0x62   :  { %778 = vmatpush3.bf16.msra.mxu1 %v849_v16 }
  0x63   :  { %748 = vmatpush3.bf16.msra.mxu0 %v834_v9  ;;  %779 = vmatprep.subr.bf16.mxu1 %v850_v22 }
  0x64   :  { %749 = vmatprep.subr.bf16.mxu0 %v835_v11 }
  0x66   :  { %780 = vmatpush3.bf16.msra.mxu1 %v850_v22 }
  0x67   :  { %750 = vmatpush3.bf16.msra.mxu0 %v835_v11  ;;  %781 = vmatprep.subr.bf16.mxu1 %v851_v23 }
  0x6a   :  { %752 = vmatmul.mubr.bf16.vlgmr.msra.gmra.mrb[0].mxu0 %v837_v14  ;;  %782 = vmatpush3.bf16.msra.mxu1 %v851_v23 }
  0x6b   :  { %755 = vmatprep.mubr.bf16.mxu0 %v838_v15 }
  0x72   :  { %756 = vmatmul.mubr.bf16.gmra.mrb[4].mxu0 %v839_v17  ;;  %v976_v17 = vmov 0.0  }
  0x73   :  { %759 = vmatprep.mubr.bf16.mxu0 %v840_v18  ;;  %799 = vmatprep.subr.bf16.mxu0 %v976_v17 }
  0x7a   :  { %760 = vmatmul.mubr.bf16.gmra.mrb[8].mxu0 %v841_v19 }
  0x7b   :  { %763 = vmatprep.mubr.bf16.mxu0 %v842_v20 }
  0x82   :  { %764 = vmatmul.mubr.bf16.gmra.mrb[12].mxu0 %v843_v21 }
  0x83   :  { %815 = vmatprep.mubr.msk.bf16.mxu0 %vm977_vm0, %v976_v17 }
 0x13d   :  { %v753_v25 = vpop.f32.mrb[0].mxu0 }
 0x13e   :  { %v401_v26 = vadd.f32 %v753_v25, %v685_v24  ;;  %v278_v27 = vpop.f32.mrb[1].mxu0 }
 0x13f   :  { %v399_v28 = vadd.f32 %v685_v24, %v278_v27  ;;  %v754_v29 = vpop.f32.mrb[2].mxu0 }
 0x140   :  { %v402_v30 = vadd.f32 %v754_v29, %v685_v24  ;;  %v281_v31 = vpop.f32.mrb[3].mxu0  ;;  %v417_v33 = vmax.f32 %v401_v26, 0.0 }
 0x141   :  { %v400_v32 = vadd.f32 %v685_v24, %v281_v31  ;;  %v415_v35 = vmax.f32 %v399_v28, 0.0 }
 0x142   :  { %v418_v34 = vmax.f32 %v402_v30, 0.0 }
 0x143   :  { %v416_v36 = vmax.f32 %v400_v32, 0.0 }
 0x144   :  { %v432_v37 = vpack.c.bf16 %v418_v34, %v417_v33 }
 0x145   :  { %v757_v38 = vpop.f32.mrb[4].mxu0  ;;  %v431_v39 = vpack.c.bf16 %v416_v36, %v415_v35 }
 0x146   :  { %v405_v40 = vadd.f32 %v757_v38, %v685_v24  ;;  %v294_v41 = vpop.f32.mrb[5].mxu0 }
 0x147   :  { %v403_v42 = vadd.f32 %v685_v24, %v294_v41  ;;  %v758_v43 = vpop.f32.mrb[6].mxu0  ;;  %783 = vmatprep.mubr.bf16.mxu1 %v431_v39 }
 0x148   :  { %v406_v44 = vadd.f32 %v758_v43, %v685_v24  ;;  %v297_v45 = vpop.f32.mrb[7].mxu0  ;;  %784 = vmatmul.mubr.bf16.vlgmr.msra.gmra.mrb[0].mxu1 %v432_v37  ;;  %v421_v47 = vmax.f32 %v405_v40, 0.0 }
 0x149   :  { %v404_v46 = vadd.f32 %v685_v24, %v297_v45  ;;  %v419_v49 = vmax.f32 %v403_v42, 0.0  ;;  %v600_v42 = vld [vmem:[#allocation6] sm:$0xf] }
 0x14a   :  { %v422_v48 = vmax.f32 %v406_v44, 0.0 }
 0x14b   :  { %v420_v50 = vmax.f32 %v404_v46, 0.0 }
 0x14c   :  { %v434_v51 = vpack.c.bf16 %v422_v48, %v421_v47 }
 0x14d   :  { %v433_v52 = vpack.c.bf16 %v420_v50, %v419_v49  ;;  %v761_v53 = vpop.f32.mrb[8].mxu0 }
 0x14e   :  { %v409_v54 = vadd.f32 %v761_v53, %v685_v24  ;;  %v310_v55 = vpop.f32.mrb[9].mxu0 }
 0x14f   :  { %v407_v56 = vadd.f32 %v685_v24, %v310_v55  ;;  %v762_v57 = vpop.f32.mrb[10].mxu0  ;;  %787 = vmatprep.mubr.bf16.mxu1 %v433_v52 }
 0x150   :  { %v410_v58 = vadd.f32 %v762_v57, %v685_v24  ;;  %v313_v59 = vpop.f32.mrb[11].mxu0  ;;  %788 = vmatmul.mubr.bf16.gmra.mrb[4].mxu1 %v434_v51  ;;  %v425_v61 = vmax.f32 %v409_v54, 0.0 }
 0x151   :  { %v408_v60 = vadd.f32 %v685_v24, %v313_v59  ;;  %v423_v63 = vmax.f32 %v407_v56, 0.0 }
 0x152   :  { %v426_v62 = vmax.f32 %v410_v58, 0.0 }
 0x153   :  { %v424_v0 = vmax.f32 %v408_v60, 0.0 }
 0x154   :  { %v436_v1 = vpack.c.bf16 %v426_v62, %v425_v61 }
 0x155   :  { %v435_v2 = vpack.c.bf16 %v424_v0, %v423_v63  ;;  %v765_v3 = vpop.f32.mrb[12].mxu0 }
 0x156   :  { %v413_v4 = vadd.f32 %v765_v3, %v685_v24  ;;  %v326_v5 = vpop.f32.mrb[13].mxu0 }
 0x157   :  { %v411_v6 = vadd.f32 %v685_v24, %v326_v5  ;;  %v766_v7 = vpop.f32.mrb[14].mxu0  ;;  %791 = vmatprep.mubr.bf16.mxu1 %v435_v2 }
 0x158   :  { %v414_v8 = vadd.f32 %v766_v7, %v685_v24  ;;  %v329_v9 = vpop.f32.mrb[15].mxu0  ;;  %792 = vmatmul.mubr.bf16.gmra.mrb[8].mxu1 %v436_v1  ;;  %v429_v11 = vmax.f32 %v413_v4, 0.0 }
 0x159   :  { %v412_v10 = vadd.f32 %v685_v24, %v329_v9  ;;  %v427_v13 = vmax.f32 %v411_v6, 0.0 }
 0x15a   :  { %v430_v12 = vmax.f32 %v414_v8, 0.0 }
 0x15b   :  { %v428_v14 = vmax.f32 %v412_v10, 0.0 }
 0x15c   :  { %v438_v15 = vpack.c.bf16 %v430_v12, %v429_v11 }
 0x15d   :  { %v437_v16 = vpack.c.bf16 %v428_v14, %v427_v13 }
 0x15f   :  { %795 = vmatprep.mubr.bf16.mxu1 %v437_v16 }
 0x160   :  { %796 = vmatmul.mubr.bf16.gmra.mrb[12].mxu1 %v438_v15 }
 0x21b   :  { %v785_v18 = vpop.f32.mrb[0].mxu1 }
 0x21c   :  { %v537_v19 = vpop.f32.mrb[1].mxu1 }
 0x21d   :  { %v786_v20 = vpop.f32.mrb[2].mxu1 }
 0x21e   :  { %v602_v21 = vpack.c.bf16 %v786_v20, %v785_v18  ;;  %v540_v22 = vpop.f32.mrb[3].mxu1 }
 0x21f   :  { %v601_v23 = vpack.c.bf16 %v540_v22, %v537_v19 }
 0x221   :  { %800 = vmatpush3.bf16.msra.mxu0 %v601_v23 }
 0x222   :  { %801 = vmatprep.subr.bf16.mxu0 %v976_v17 }
 0x223   :  { %v789_v24 = vpop.f32.mrb[4].mxu1 }
 0x224   :  { %v553_v25 = vpop.f32.mrb[5].mxu1 }
 0x225   :  { %v790_v26 = vpop.f32.mrb[6].mxu1  ;;  %802 = vmatpush3.bf16.msra.mxu0 %v602_v21 }
 0x226   :  { %v604_v27 = vpack.c.bf16 %v790_v26, %v789_v24  ;;  %v556_v28 = vpop.f32.mrb[7].mxu1  ;;  %803 = vmatprep.subr.bf16.mxu0 %v976_v17 }
 0x227   :  { %v603_v29 = vpack.c.bf16 %v556_v28, %v553_v25 }
 0x229   :  { %804 = vmatpush3.bf16.msra.mxu0 %v603_v29 }
 0x22a   :  { %805 = vmatprep.subr.bf16.mxu0 %v976_v17 }
 0x22b   :  { %v793_v30 = vpop.f32.mrb[8].mxu1 }
 0x22c   :  { %v569_v31 = vpop.f32.mrb[9].mxu1 }
 0x22d   :  { %v794_v32 = vpop.f32.mrb[10].mxu1  ;;  %806 = vmatpush3.bf16.msra.mxu0 %v604_v27 }
 0x22e   :  { %v606_v33 = vpack.c.bf16 %v794_v32, %v793_v30  ;;  %v572_v34 = vpop.f32.mrb[11].mxu1  ;;  %807 = vmatprep.subr.bf16.mxu0 %v976_v17 }
 0x22f   :  { %v605_v35 = vpack.c.bf16 %v572_v34, %v569_v31 }
 0x231   :  { %808 = vmatpush3.bf16.msra.mxu0 %v605_v35 }
 0x232   :  { %809 = vmatprep.subr.bf16.mxu0 %v976_v17 }
 0x233   :  { %v797_v36 = vpop.f32.mrb[12].mxu1 }
 0x234   :  { %v585_v37 = vpop.f32.mrb[13].mxu1 }
 0x235   :  { %v798_v38 = vpop.f32.mrb[14].mxu1  ;;  %810 = vmatpush3.bf16.msra.mxu0 %v606_v33 }
 0x236   :  { %v608_v39 = vpack.c.bf16 %v798_v38, %v797_v36  ;;  %v588_v40 = vpop.f32.mrb[15].mxu1  ;;  %811 = vmatprep.subr.bf16.mxu0 %v976_v17 }
 0x237   :  { %v607_v41 = vpack.c.bf16 %v588_v40, %v585_v37 }
 0x239   :  { %812 = vmatpush3.bf16.msra.mxu0 %v607_v41 }
 0x23a   :  { %813 = vmatprep.subr.bf16.mxu0 %v976_v17 }
 0x23d   :  { %814 = vmatpush3.bf16.msra.mxu0 %v608_v39 }
 0x240   :  { %816 = vmatmul.mubr.bf16.vlgmr.msra.gmra.mrb[16].mxu0 %v600_v42 }
 0x313   :  { %v643_v43 = vpop.f32.mrb[16].mxu0 }
 0x314   :  { %649 = vst [vmem:[#allocation11] sm:$0xff] %v643_v43  ;;  %v817_v44 = vpop.f32.mrb[17].mxu0 }
 0x315   :  { %v646_v45 = vpop.f32.mrb[18].mxu0 }
 0x316   :  { %951 = shalt.err (!%p948_p8)
}
 0x317   :  { %s952_s19 = scalar_lea.hbm %s1100_s5, 128 }
 0x318   :  { %p953_p9 = scmp.ne.s32.totalorder %s1100_s5, %s952_s19  ;;  %p956_p10 = scmp.lt.u32.totalorder %s952_s19, %s1100_s5 }
 0x31a   :  { %p958_p11 = pnand %p956_p10, %p953_p9 }
 0x31c   :  { %961 = shalt.err (!%p958_p11)
}
 0x31d   :  { %659 = dma.vmem_to_hbm [thread:$0]  %s657_s15, 128, %s1100_s5, [#allocation5]   ;;  %v818_v46 = vpop.f32.mrb[19].mxu0 }
 0x31e   :  { %968 = dma.done.wait [#allocation5], 128  }
 0x31f   :  { %969 = vsyncadd [#allocation5], 4294967168 }
 0x320   :  { %663 = vsyncpa [#allocation4], 1 }
 0x321   :  { %664 = vsyncpa [#allocation7], 1 }
 0x322   :  { %665 = vsyncpa [#allocation10], 1 }
 0x323   :  { %666 = vsyncpa [#allocation5], 1 }

</bundles_post_ra>
